<compile_context>
chip_gen: v7x
topology: tpu7x:2x2x1
jax: 0.10.0
libtpu: 0.0.40
codegen_flags: <defaults>
</compile_context>

<pallas_src>
import functools

import jax
import jax.numpy as jnp
from jax import lax
from jax.experimental import pallas as pl
from jax.experimental.pallas import tpu as pltpu


def _round_up(a, m):
    return (a + m - 1) // m * m


def _global_sa_kernel(lo_ref, hi_ref, pts_ref, w1_ref, b1_ref, w2_ref, b2_ref,
                      out_ref, *, feat_cols):
    """One point tile: packed-input MLP + segmented-max accumulate.

    lo_ref/hi_ref : SMEM int32[num_tiles], per-tile segment id range (inclusive).
    pts_ref       : [TM, PK] packed points (x | pos | bid-as-float).
    w1_ref        : [PK, H_pad] bf16 (bid row is zero), b1_ref: [1, H_pad] f32.
    w2_ref        : [H_pad, C_pad] bf16, b2_ref: [1, C_pad] f32.
    out_ref       : [B_pad, C_pad] f32 resident max accumulator.
    """
    t = pl.program_id(0)

    # Init the resident accumulator to the max-pool identity once.
    @pl.when(t == 0)
    def _():
        out_ref[...] = jnp.full(out_ref.shape, -jnp.inf, dtype=out_ref.dtype)

    pts = pts_ref[...]                                       # [TM, PK]
    bid = pts[:, feat_cols:feat_cols + 1].astype(jnp.float32)  # [TM, 1] (-1 for pad rows)

    # Fused concat([x, pos]) @ W1: the packed bid column multiplies a zero W1 row.
    h = jnp.dot(pts.astype(jnp.bfloat16), w1_ref[...],
                preferred_element_type=jnp.float32) + b1_ref[...]
    h = jnp.maximum(h, 0.0)                                  # [TM, H_pad] f32
    o = jnp.dot(h.astype(jnp.bfloat16), w2_ref[...],
                preferred_element_type=jnp.float32) + b2_ref[...]
    o = jnp.maximum(o, 0.0)                                  # [TM, C_pad] f32

    # Only visit segments present in this tile (scalar-prefetched range).
    lo = lo_ref[t]
    hi = hi_ref[t]

    def seg_body(b, carry):
        m = jnp.max(jnp.where(bid == b.astype(jnp.float32), o, -jnp.inf),
                    axis=0, keepdims=True)                   # [1, C_pad]
        cur = out_ref[pl.ds(b, 1), :]
        out_ref[pl.ds(b, 1), :] = jnp.maximum(cur, m)
        return carry

    # Empty tiles (all padding) have lo > hi -> zero iterations.
    lax.fori_loop(lo, hi + 1, seg_body, 0)


def global_sa_module(x, pos, batch, params, *, num_segments, tile_m=2048):
    """x: [N, Cx] f32, pos: [N, 3] f32, batch: [N] int32 with ids in [0, num_segments)."""
    w1, b1, w2, b2 = params
    n, cx = x.shape
    cp = pos.shape[1]
    hidden = w1.shape[1]
    c_out = w2.shape[1]
    feat_cols = cx + cp
    pk = feat_cols + 1                       # packed width: x | pos | bid

    # Lane-pad hidden / c_out to 128 (dense MXU N-dims and dense output stores);
    # sublane-pad the segment count to 8 (dense accumulator init/store).
    h_pad = _round_up(hidden, 128)
    c_pad = _round_up(c_out, 128)
    b_pad = _round_up(num_segments, 8)

    # Row-packed W1 matching the packed point layout; bid row stays zero.
    w1_packed = jnp.zeros((pk, h_pad), jnp.float32)
    w1_packed = w1_packed.at[:feat_cols, :hidden].set(w1.astype(jnp.float32))
    w1_packed = w1_packed.astype(jnp.bfloat16)
    b1p = jnp.pad(b1.astype(jnp.float32).reshape(1, hidden),
                  ((0, 0), (0, h_pad - hidden)))
    w2p = jnp.pad(w2.astype(jnp.float32),
                  ((0, h_pad - hidden), (0, c_pad - c_out))).astype(jnp.bfloat16)
    b2p = jnp.pad(b2.astype(jnp.float32).reshape(1, c_out),
                  ((0, 0), (0, c_pad - c_out)))

    # Point-tile sizing: large tiles amortize per-step overhead; capped for tiny inputs.
    tile = max(8, min(tile_m, _round_up(n, 8)))
    tile = _round_up(tile, 8)
    num_tiles = -(-n // tile)
    n_pad = num_tiles * tile

    # Single packed point stream. bf16 keeps batch ids exact up to 256 segments;
    # fall back to f32 packing for larger segment counts.
    pack_dtype = jnp.bfloat16 if num_segments <= 256 else jnp.float32
    packed = jnp.concatenate(
        [x.astype(jnp.float32), pos.astype(jnp.float32),
         batch.astype(jnp.float32)[:, None]], axis=1)                 # [N, PK]
    packed = jnp.pad(packed, ((0, n_pad - n), (0, 0)),
                     constant_values=-1.0)        # pad rows get bid=-1 -> no segment
    packed = packed.astype(pack_dtype)

    # Per-tile (seg_lo, seg_hi) for the scalar-prefetched epilogue range.
    bid_pad = jnp.pad(batch.astype(jnp.int32), (0, n_pad - n), constant_values=-1)
    bid_tiles = bid_pad.reshape(num_tiles, tile)
    seg_lo = jnp.min(jnp.where(bid_tiles >= 0, bid_tiles, num_segments),
                     axis=1).astype(jnp.int32)
    seg_hi = jnp.max(bid_tiles, axis=1).astype(jnp.int32)

    kernel = functools.partial(_global_sa_kernel, feat_cols=feat_cols)

    out = pl.pallas_call(
        kernel,
        out_shape=jax.ShapeDtypeStruct((b_pad, c_pad), jnp.float32),
        grid_spec=pltpu.PrefetchScalarGridSpec(
            num_scalar_prefetch=2,
            grid=(num_tiles,),
            in_specs=[
                pl.BlockSpec((tile, pk), lambda t, lo, hi: (t, 0)),      # packed points
                pl.BlockSpec((pk, h_pad), lambda t, lo, hi: (0, 0)),     # W1 (packed rows)
                pl.BlockSpec((1, h_pad), lambda t, lo, hi: (0, 0)),      # b1
                pl.BlockSpec((h_pad, c_pad), lambda t, lo, hi: (0, 0)),  # W2
                pl.BlockSpec((1, c_pad), lambda t, lo, hi: (0, 0)),      # b2
            ],
            out_specs=pl.BlockSpec((b_pad, c_pad), lambda t, lo, hi: (0, 0)),
        ),
        compiler_params=pltpu.CompilerParams(
            dimension_semantics=("arbitrary",),
            vmem_limit_bytes=64 * 1024 * 1024),
    )(seg_lo, seg_hi, packed, w1_packed, b1p, w2p, b2p)

    # Drop padding; clamp never-touched (empty) segments from -inf to 0.
    pooled = out[:num_segments, :c_out]
    pooled = jnp.where(jnp.isneginf(pooled), 0.0, pooled)

    pos_out = jnp.zeros((num_segments, 3), dtype=pos.dtype)
    batch_out = jnp.arange(num_segments, dtype=jnp.int32)
    return pooled, pos_out, batch_out


def init_params(key, c_in, hidden, c_out):
    k1, k2, k3, k4 = jax.random.split(key, 4)
    w1 = jax.random.normal(k1, (c_in, hidden), jnp.float32) * 0.1
    b1 = jax.random.normal(k2, (1, hidden), jnp.float32) * 0.01
    w2 = jax.random.normal(k3, (hidden, c_out), jnp.float32) * 0.1
    b2 = jax.random.normal(k4, (1, c_out), jnp.float32) * 0.01
    return w1, b1, w2, b2


def _reference(x, pos, batch, params, num_segments):
    w1, b1, w2, b2 = params
    t = jnp.concatenate([x, pos], axis=1)
    h = jnp.maximum(t @ w1 + b1, 0.0)
    o = jnp.maximum(h @ w2 + b2, 0.0)
    ref = jax.ops.segment_max(o, batch, num_segments=num_segments)
    return jnp.where(jnp.isneginf(ref), 0.0, ref)


if __name__ == "__main__":
    key = jax.random.PRNGKey(0)
    kx, kp, kw = jax.random.split(key, 3)

    # Small shapes matching the module's forward: N points, Cx features, B clouds.
    N, Cx, B = 16, 4, 2
    HIDDEN, C_OUT = 32, 64
    C_IN = Cx + 3

    x = jax.random.normal(kx, (N, Cx), jnp.float32)
    pos = jax.random.normal(kp, (N, 3), jnp.float32)
    batch = jnp.repeat(jnp.arange(B, dtype=jnp.int32), N // B)  # sorted ids

    params = init_params(kw, C_IN, HIDDEN, C_OUT)

    # Small demo run (single tile).
    x_out, pos_out, batch_out = global_sa_module(
        x, pos, batch, params, num_segments=B)
    jax.block_until_ready((x_out, pos_out, batch_out))

    ref = _reference(x, pos, batch, params, B)
    # bf16 matmuls (f32 accumulation) => loosened tolerance vs. the f32 reference.
    assert jnp.allclose(x_out, ref, atol=3e-2, rtol=3e-2), "mismatch vs reference"
    assert x_out.shape == (B, C_OUT) and pos_out.shape == (B, 3)
    assert (batch_out == jnp.arange(B)).all()

    # Larger run exercising multi-tile accumulation + the prefetched segment ranges.
    N2, B2 = 4096, 4
    x2 = jax.random.normal(kx, (N2, Cx), jnp.float32)
    pos2 = jax.random.normal(kp, (N2, 3), jnp.float32)
    batch2 = jnp.repeat(jnp.arange(B2, dtype=jnp.int32), N2 // B2)
    x2_out, _, _ = global_sa_module(
        x2, pos2, batch2, params, num_segments=B2, tile_m=2048)
    jax.block_until_ready(x2_out)
    ref2 = _reference(x2, pos2, batch2, params, B2)
    assert jnp.allclose(x2_out, ref2, atol=5e-2, rtol=5e-2), "mismatch (large run)"

    print("KERNEL_OK")
</pallas_src>

<mosaic_0001>
module attributes {stable_mosaic.version = 11 : i64} {
  func.func @_global_sa_kernel(%arg0: i32, %arg1: memref<1xi32, #tpu.memory_space<smem>>, %arg2: memref<1xi32, #tpu.memory_space<smem>>, %arg3: memref<16x8xbf16, #tpu.memory_space<vmem>>, %arg4: memref<8x128xbf16, #tpu.memory_space<vmem>>, %arg5: memref<1x128xf32, #tpu.memory_space<vmem>>, %arg6: memref<128x128xbf16, #tpu.memory_space<vmem>>, %arg7: memref<1x128xf32, #tpu.memory_space<vmem>>, %arg8: memref<8x128xf32, #tpu.memory_space<vmem>>) attributes {dimension_semantics = [#tpu.dimension_semantics<arbitrary>], iteration_bounds = array<i64: 1>, scalar_prefetch = 2 : i64, scratch_operands = 0 : i64, tpu.core_type = #tpu.core_type<tc>, window_params = [{transform_indices = @transform_0, window_bounds = array<i64: 16, 8>}, {pipeline_mode = #tpu.pipeline_mode<synchronous>, transform_indices = @transform_1, window_bounds = array<i64: 8, 128>}, {pipeline_mode = #tpu.pipeline_mode<synchronous>, transform_indices = @transform_2, window_bounds = array<i64: 1, 128>}, {pipeline_mode = #tpu.pipeline_mode<synchronous>, transform_indices = @transform_3, window_bounds = array<i64: 128, 128>}, {pipeline_mode = #tpu.pipeline_mode<synchronous>, transform_indices = @transform_4, window_bounds = array<i64: 1, 128>}, {pipeline_mode = #tpu.pipeline_mode<synchronous>, transform_indices = @transform_5, window_bounds = array<i64: 8, 128>}]} {
    %c0_i32 = arith.constant 0 : i32
    %0 = arith.cmpi eq, %arg0, %c0_i32 : i32
    %1 = arith.extui %0 : i1 to i32
    %c0_i32_0 = arith.constant 0 : i32
    %2 = arith.cmpi ne, %1, %c0_i32_0 : i32
    scf.if %2 {
      %cst_15 = arith.constant 0xFF800000 : f32
      %28 = vector.broadcast %cst_15 : f32 to vector<8x128xf32>
      %c0_16 = arith.constant 0 : index
      %c0_17 = arith.constant 0 : index
      %29 = vector.load %arg8[%c0_16, %c0_17] : memref<8x128xf32, #tpu.memory_space<vmem>>, vector<8x128xf32>
      tpu.vector_store %arg8[%c0_16, %c0_17], %28 {strides = array<i32>} : memref<8x128xf32, #tpu.memory_space<vmem>>, vector<8x128xf32>,
    } else {
    }
    %c0 = arith.constant 0 : index
    %c0_1 = arith.constant 0 : index
    %3 = vector.load %arg3[%c0, %c0_1] : memref<16x8xbf16, #tpu.memory_space<vmem>>, vector<16x8xbf16>
    %4 = vector.extract_strided_slice %3 {offsets = [0, 7], sizes = [16, 1], strides = [1, 1]} : vector<16x8xbf16> to vector<16x1xbf16>
    %5 = arith.extf %4 : vector<16x1xbf16> to vector<16x1xf32>
    %c0_2 = arith.constant 0 : index
    %c0_3 = arith.constant 0 : index
    %6 = vector.load %arg4[%c0_2, %c0_3] : memref<8x128xbf16, #tpu.memory_space<vmem>>, vector<8x128xbf16>
    %cst = arith.constant dense<0.000000e+00> : vector<16x128xf32>
    %7 = tpu.matmul %3, %6, %cst {dimension_numbers = #tpu.dot_dimension_numbers<[1], [0], [0], [1], [0, 0, 1, 1], [], []>} : vector<16x8xbf16>, vector<8x128xbf16>, vector<16x128xf32> -> vector<16x128xf32>
    %c0_4 = arith.constant 0 : index
    %c0_5 = arith.constant 0 : index
    %8 = vector.load %arg5[%c0_4, %c0_5] : memref<1x128xf32, #tpu.memory_space<vmem>>, vector<1x128xf32>
    %9 = vector.broadcast %8 : vector<1x128xf32> to vector<16x128xf32>
    %10 = arith.addf %7, %9 : vector<16x128xf32>
    %cst_6 = arith.constant 0.000000e+00 : f32
    %11 = vector.broadcast %cst_6 : f32 to vector<16x128xf32>
    %12 = arith.maximumf %10, %11 : vector<16x128xf32>
    %13 = arith.truncf %12 : vector<16x128xf32> to vector<16x128xbf16>
    %c0_7 = arith.constant 0 : index
    %c0_8 = arith.constant 0 : index
    %14 = vector.load %arg6[%c0_7, %c0_8] : memref<128x128xbf16, #tpu.memory_space<vmem>>, vector<128x128xbf16>
    %cst_9 = arith.constant dense<0.000000e+00> : vector<16x128xf32>
    %15 = tpu.matmul %13, %14, %cst_9 {dimension_numbers = #tpu.dot_dimension_numbers<[1], [0], [0], [1], [0, 0, 1, 1], [], []>} : vector<16x128xbf16>, vector<128x128xbf16>, vector<16x128xf32> -> vector<16x128xf32>
    %c0_10 = arith.constant 0 : index
    %c0_11 = arith.constant 0 : index
    %16 = vector.load %arg7[%c0_10, %c0_11] : memref<1x128xf32, #tpu.memory_space<vmem>>, vector<1x128xf32>
    %17 = vector.broadcast %16 : vector<1x128xf32> to vector<16x128xf32>
    %18 = arith.addf %15, %17 : vector<16x128xf32>
    %cst_12 = arith.constant 0.000000e+00 : f32
    %19 = vector.broadcast %cst_12 : f32 to vector<16x128xf32>
    %20 = arith.maximumf %18, %19 : vector<16x128xf32>
    %21 = arith.index_cast %arg0 : i32 to index
    %22 = memref.load %arg1[%21] : memref<1xi32, #tpu.memory_space<smem>>
    %23 = arith.index_cast %arg0 : i32 to index
    %24 = memref.load %arg2[%23] : memref<1xi32, #tpu.memory_space<smem>>
    %c1_i32 = arith.constant 1 : i32
    %25 = arith.addi %24, %c1_i32 : i32
    %c0_i32_13 = arith.constant 0 : i32
    %26 = arith.subi %25, %22 : i32
    %27 = arith.addi %22, %26 : i32
    %c1_i32_14 = arith.constant 1 : i32
    scf.for %arg9 = %22 to %27 step %c1_i32_14  : i32 {
      %28 = arith.sitofp %arg9 : i32 to f32
      %29 = vector.broadcast %28 : f32 to vector<16x1xf32>
      %30 = arith.cmpf oeq, %5, %29 : vector<16x1xf32>
      %cst_15 = arith.constant 0xFF800000 : f32
      %31 = vector.shape_cast %30 : vector<16x1xi1> to vector<16x1xi1>
      %32 = vector.broadcast %31 : vector<16x1xi1> to vector<16x128xi1>
      %33 = vector.broadcast %cst_15 : f32 to vector<16x128xf32>
      %34 = arith.select %32, %20, %33 : vector<16x128xi1>, vector<16x128xf32>
      %cst_16 = arith.constant dense<0xFF800000> : vector<128xf32>
      %35 = vector.multi_reduction <maximumf>, %34, %cst_16 [0] : vector<16x128xf32> to vector<128xf32>
      %36 = vector.shape_cast %35 : vector<128xf32> to vector<1x128xf32>
      %37 = arith.index_cast %arg9 : i32 to index
      %c0_17 = arith.constant 0 : index
      %38 = vector.load %arg8[%37, %c0_17] : memref<8x128xf32, #tpu.memory_space<vmem>>, vector<1x128xf32>
      %39 = arith.maximumf %38, %36 : vector<1x128xf32>
      %40 = arith.index_cast %arg9 : i32 to index
      %c0_18 = arith.constant 0 : index
      %41 = vector.load %arg8[%40, %c0_18] : memref<8x128xf32, #tpu.memory_space<vmem>>, vector<1x128xf32>
      tpu.vector_store %arg8[%40, %c0_18], %39 {strides = array<i32>} : memref<8x128xf32, #tpu.memory_space<vmem>>, vector<1x128xf32>,
    }
    return
  }
  func.func @transform_0(%arg0: i32, %arg1: memref<1xi32, #tpu.memory_space<smem>>, %arg2: memref<1xi32, #tpu.memory_space<smem>>) -> (i32, i32) {
    %c0_i32 = arith.constant 0 : i32
    %c0_i32_0 = arith.constant 0 : i32
    return %arg0, %c0_i32 : i32, i32
  }
  func.func @transform_1(%arg0: i32, %arg1: memref<1xi32, #tpu.memory_space<smem>>, %arg2: memref<1xi32, #tpu.memory_space<smem>>) -> (i32, i32) {
    %c0_i32 = arith.constant 0 : i32
    %c0_i32_0 = arith.constant 0 : i32
    %c0_i32_1 = arith.constant 0 : i32
    return %c0_i32, %c0_i32_0 : i32, i32
  }
  func.func @transform_2(%arg0: i32, %arg1: memref<1xi32, #tpu.memory_space<smem>>, %arg2: memref<1xi32, #tpu.memory_space<smem>>) -> (i32, i32) {
    %c0_i32 = arith.constant 0 : i32
    %c0_i32_0 = arith.constant 0 : i32
    %c0_i32_1 = arith.constant 0 : i32
    return %c0_i32, %c0_i32_0 : i32, i32
  }
  func.func @transform_3(%arg0: i32, %arg1: memref<1xi32, #tpu.memory_space<smem>>, %arg2: memref<1xi32, #tpu.memory_space<smem>>) -> (i32, i32) {
    %c0_i32 = arith.constant 0 : i32
    %c0_i32_0 = arith.constant 0 : i32
    %c0_i32_1 = arith.constant 0 : i32
    return %c0_i32, %c0_i32_0 : i32, i32
  }
  func.func @transform_4(%arg0: i32, %arg1: memref<1xi32, #tpu.memory_space<smem>>, %arg2: memref<1xi32, #tpu.memory_space<smem>>) -> (i32, i32) {
    %c0_i32 = arith.constant 0 : i32
    %c0_i32_0 = arith.constant 0 : i32
    %c0_i32_1 = arith.constant 0 : i32
    return %c0_i32, %c0_i32_0 : i32, i32
  }
  func.func @transform_5(%arg0: i32, %arg1: memref<1xi32, #tpu.memory_space<smem>>, %arg2: memref<1xi32, #tpu.memory_space<smem>>) -> (i32, i32) {
    %c0_i32 = arith.constant 0 : i32
    %c0_i32_0 = arith.constant 0 : i32
    %c0_i32_1 = arith.constant 0 : i32
    return %c0_i32, %c0_i32_0 : i32, i32
  }
}

</mosaic_0001>

<bundles_post_ra>
// kernel: tpu_custom_call.1
= control target key start
LH: loop header
LB: loop body
LE: loop exit
PB: predicated region body
PF: predicated region fallthrough
CT: control target
= control target key end

     0   :  { %14 = vsyncpa [#allocation6], 0  ;;  %s725_s0 = inlined_call_operand.<no memory space> [shape: s32[1], index: 0, kind: input, shape index: {}]   ;;  %s726_s1 = inlined_call_operand.<no memory space> [shape: s32[1], index: 1, kind: input, shape index: {}]   ;;  %s727_s2 = inlined_call_operand.hbm [shape: bf16[16,8], index: 2, kind: input, shape index: {}]   ;;  %s728_s3 = inlined_call_operand.hbm [shape: bf16[8,128], index: 3, kind: input, shape index: {}]   ;;  %s729_s4 = inlined_call_operand.hbm [shape: f32[1,128], index: 4, kind: input, shape index: {}]   ;;  %s730_s5 = inlined_call_operand.hbm [shape: bf16[128,128], index: 5, kind: input, shape index: {}]   ;;  %s731_s6 = inlined_call_operand.hbm [shape: f32[1,128], index: 6, kind: input, shape index: {}]   ;;  %s732_s7 = inlined_call_operand.hbm [shape: f32[8,128], index: 7, kind: output, shape index: {}]  }
   0x1   :  { %15 = vsyncpa [#allocation9], 0 }
   0x2   :  { %16 = vsyncpa [#allocation12], 0 }
   0x3   :  { %17 = vsyncpa [#allocation7], 0  ;;  %s564_s24 = smov [#allocation8]   ;;  %s416_s28 = scalar_lea.hbm %s728_s3, 64 }
   0x4   :  { %s36_s25 = sshll.u32 %s564_s24, 4  ;;  %p417_p0 = scmp.ne.s32.totalorder %s728_s3, %s416_s28  ;;  %s37_s25 = int_to_ptr.vmem [resolvable:$true] %s36_s25 }
   0x5   :  { %p420_p1 = scmp.lt.u32.totalorder %s416_s28, %s728_s3 }
   0x7   :  { %p422_p2 = pnand %p420_p1, %p417_p0 }
   0x9   :  { %425 = shalt.err (!%p422_p2)
}
   0xa   :  { %s426_s10 = scalar_lea.vmem %s37_s25, 64  ;;  %p431_p4 = scmp.lt.s32.totalorder %s37_s25, %s37_s25 }
   0xb   :  { %p427_p3 = scmp.ne.s32.totalorder %s37_s25, %s426_s10  ;;  %p432_p5 = scmp.lt.s32.totalorder %s426_s10, %s426_s10 }
   0xd   :  { %p433_p6 = por %p432_p5, %p431_p4 }
   0xf   :  { %p434_p7 = pnand %p433_p6, %p427_p3 }
  0x11   :  { %437 = shalt.err (!%p434_p7)
}
  0x12   :  { %39 = dma.hbm_to_vmem [thread:$0]  %s728_s3, 64, %s37_s25, [#allocation9]  }
  0x13   :  { %s565_s13 = smov [#allocation11]   ;;  %s566_s15 = smov [#allocation5]  }
  0x14   :  { %s55_s14 = sshll.u32 %s565_s13, 4  ;;  %s23_s16 = sshll.u32 %s566_s15, 4  ;;  %s56_s14 = int_to_ptr.vmem [resolvable:$true] %s55_s14  ;;  %s24_s16 = int_to_ptr.vmem [resolvable:$true] %s23_s16 }
  0x15   :  { %s438_s19 = scalar_lea.hbm %s730_s5, 1024 }
  0x16   :  { %p439_p8 = scmp.ne.s32.totalorder %s730_s5, %s438_s19  ;;  %p442_p9 = scmp.lt.u32.totalorder %s438_s19, %s730_s5 }
  0x18   :  { %p444_p10 = pnand %p442_p9, %p439_p8 }
  0x1a   :  { %447 = shalt.err (!%p444_p10)
}
  0x1b   :  { %s448_s3 = scalar_lea.vmem %s56_s14, 1024  ;;  %p453_p12 = scmp.lt.s32.totalorder %s56_s14, %s56_s14 }
  0x1c   :  { %p449_p11 = scmp.ne.s32.totalorder %s56_s14, %s448_s3  ;;  %p454_p13 = scmp.lt.s32.totalorder %s448_s3, %s448_s3 }
  0x1e   :  { %p455_p0 = por %p454_p13, %p453_p12 }
  0x20   :  { %p456_p1 = pnand %p455_p0, %p449_p11 }
  0x22   :  { %459 = shalt.err (!%p456_p1)
}
  0x23   :  { %s567_s24 = smov 64   ;;  %s568_s25 = smov 4  }
  0x24   :  { %61 = dma.hbm_to_vmem [thread:$0]  %s730_s5, 1024, %s56_s14, [#allocation12], %s567_s24, %s567_s24, %s568_s25  }
  0x25   :  { %s460_s30 = scalar_lea.hbm %s727_s2, 128 }
  0x26   :  { %p461_p2 = scmp.ne.s32.totalorder %s727_s2, %s460_s30  ;;  %p464_p3 = scmp.lt.u32.totalorder %s460_s30, %s727_s2 }
  0x28   :  { %p466_p4 = pnand %p464_p3, %p461_p2 }
  0x2a   :  { %469 = shalt.err (!%p466_p4)
}
  0x2b   :  { %s470_s12 = scalar_lea.vmem %s24_s16, 128  ;;  %p475_p6 = scmp.lt.s32.totalorder %s24_s16, %s24_s16 }
  0x2c   :  { %p471_p5 = scmp.ne.s32.totalorder %s24_s16, %s470_s12  ;;  %p476_p7 = scmp.lt.s32.totalorder %s470_s12, %s470_s12 }
  0x2e   :  { %p477_p8 = por %p476_p7, %p475_p6 }
  0x30   :  { %p478_p9 = pnand %p477_p8, %p471_p5 }
  0x32   :  { %481 = shalt.err (!%p478_p9)
}
  0x33   :  { %29 = dma.hbm_to_vmem [thread:$0]  %s727_s2, 128, %s24_s16, [#allocation6], %s567_s24, %s567_s24, %s568_s25  }
  0x34   :  { %s569_s14 = smov [#allocation10]   ;;  %s570_s17 = smov [#allocation13]  }
  0x35   :  { %s46_s15 = sshll.u32 %s569_s14, 4  ;;  %s68_s18 = sshll.u32 %s570_s17, 4  ;;  %s47_s15 = int_to_ptr.vmem [resolvable:$true] %s46_s15  ;;  %s69_s18 = int_to_ptr.vmem [resolvable:$true] %s68_s18 }
  0x36   :  { %s482_s21 = scalar_lea.hbm %s729_s4, 16 }
  0x37   :  { %p483_p10 = scmp.ne.s32.totalorder %s729_s4, %s482_s21  ;;  %p486_p11 = scmp.lt.u32.totalorder %s482_s21, %s729_s4 }
  0x39   :  { %p488_p12 = pnand %p486_p11, %p483_p10 }
  0x3b   :  { %491 = shalt.err (!%p488_p12)
}
  0x3c   :  { %s492_s2 = scalar_lea.vmem %s47_s15, 16  ;;  %s496_s16 = scalar_lea.vmem %s47_s15, 32 }
  0x3d   :  { %p493_p13 = scmp.ne.s32.totalorder %s47_s15, %s492_s2  ;;  %p497_p0 = scmp.lt.s32.totalorder %s47_s15, %s47_s15 }
  0x3e   :  { %p498_p1 = scmp.lt.s32.totalorder %s496_s16, %s492_s2 }
  0x40   :  { %p499_p2 = por %p498_p1, %p497_p0 }
  0x42   :  { %p500_p3 = pnand %p499_p2, %p493_p13 }
  0x44   :  { %503 = shalt.err (!%p500_p3)
}
  0x45   :  { %49 = dma.hbm_to_vmem [thread:$0]  %s729_s4, 16, %s47_s15, [#allocation9]  }
  0x46   :  { %s504_s29 = scalar_lea.hbm %s731_s6, 16 }
  0x47   :  { %p505_p4 = scmp.ne.s32.totalorder %s731_s6, %s504_s29  ;;  %p508_p5 = scmp.lt.u32.totalorder %s504_s29, %s731_s6 }
  0x49   :  { %p510_p6 = pnand %p508_p5, %p505_p4 }
  0x4b   :  { %513 = shalt.err (!%p510_p6)
}
  0x4c   :  { %s514_s11 = scalar_lea.vmem %s69_s18, 16  ;;  %s518_s12 = scalar_lea.vmem %s69_s18, 32 }
  0x4d   :  { %p515_p7 = scmp.ne.s32.totalorder %s69_s18, %s514_s11  ;;  %p519_p8 = scmp.lt.s32.totalorder %s69_s18, %s69_s18 }
  0x4e   :  { %p520_p9 = scmp.lt.s32.totalorder %s518_s12, %s514_s11 }
  0x50   :  { %p521_p10 = por %p520_p9, %p519_p8 }
  0x52   :  { %p522_p11 = pnand %p521_p10, %p515_p7 }
  0x54   :  { %525 = shalt.err (!%p522_p11)
}
  0x55   :  { %71 = dma.hbm_to_vmem [thread:$0]  %s731_s6, 16, %s69_s18, [#allocation12]  }
  0x56   :  { %552 = dma.done.wait [#allocation6], 128  }
  0x57   :  { %553 = vsyncadd [#allocation6], 4294967168 }
  0x58   :  { %554 = dma.done.wait [#allocation9], 80  }
  0x59   :  { %555 = vsyncadd [#allocation9], 4294967216 }
  0x5a   :  { %556 = dma.done.wait [#allocation12], 1040  }
  0x5b   :  { %557 = vsyncadd [#allocation12], 4294966256  ;;  %v571_v0 = vmov -inf   ;;  %v572_v1 = vmov 0.0   ;;  %vm573_vm0 = vmmov 0   ;;  %vm114_vm1 = vcmask 1043456  }
  0x5c   :  { %92 = vst [vmem:[#allocation14] sm:$0xff] %v571_v0  ;;  %358 = vmatprep.subr.bf16.mxu0 %v572_v1  ;;  %360 = vmatprep.mubr.msk.bf16.mxu0 %vm573_vm0, %v572_v1  ;;  %v97_v2 = vld [vmem:[#allocation8] sm:$0xf]  ;;  %v677_v3 = vld [vmem:[#allocation5] sm:$0xff]   ;;  %v406_v7 = vld [vmem:[#allocation11] sm:$0xff]   ;;  %vm110_vm2 = vcmask 64512  }
  0x5d   :  { %364 = vmatprep.subr.bf16.mxu1 %v572_v1  ;;  %380 = vmatprep.mubr.msk.bf16.mxu1 %vm573_vm0, %v572_v1  ;;  %v116_v4 = vsel %vm114_vm1, %v97_v2, 0  ;;  %v95_v5 = vunpack.c.l.bf16 %v677_v3  ;;  %v96_v6 = vunpack.c.h.bf16 %v677_v3  ;;  %v407_v8 = vld [vmem:[#allocation11 + $0x8] sm:$0xff]   ;;  %v408_v9 = vld [vmem:[#allocation11 + $0x10] sm:$0xff]   ;;  %v409_v10 = vld [vmem:[#allocation11 + $0x18] sm:$0xff]   ;;  %s278_s14 = sadd.s32 1, %s726_s1 }
  0x5e   :  { %359 = vmatpush3.bf16.msra.mxu0 %v116_v4  ;;  %365 = vmatpush3.bf16.msra.mxu1 %v406_v7  ;;  %v410_v11 = vld [vmem:[#allocation11 + $0x20] sm:$0xff]   ;;  %v411_v12 = vld [vmem:[#allocation11 + $0x28] sm:$0xff]   ;;  %v412_v13 = vld [vmem:[#allocation11 + $0x30] sm:$0xff]   ;;  %p331_p12 = scmp.ge.s32.totalorder %s725_s0, %s278_s14 }
  0x5f   :  { %366 = vmatprep.subr.bf16.mxu1 %v572_v1  ;;  %v413_v14 = vld [vmem:[#allocation11 + $0x38] sm:$0xff]   ;;  %v338_v25 = vld [vmem:[#allocation13] ss:$0 sm:$0xff] }
  0x60   :  { %v335_v15 = vld [vmem:[#allocation10] ss:$0 sm:$0xff] }
  0x61   :  { %361 = vmatmul.mubr.msk.bf16.vlgmr.msra.gmra.mrb[0].mxu0 %vm110_vm2, %v677_v3 }
  0x62   :  { %367 = vmatpush3.bf16.msra.mxu1 %v407_v8 }
  0x63   :  { %368 = vmatprep.subr.bf16.mxu1 %v572_v1 }
  0x66   :  { %369 = vmatpush3.bf16.msra.mxu1 %v408_v9 }
  0x67   :  { %370 = vmatprep.subr.bf16.mxu1 %v572_v1 }
  0x6a   :  { %371 = vmatpush3.bf16.msra.mxu1 %v409_v10 }
  0x6b   :  { %372 = vmatprep.subr.bf16.mxu1 %v572_v1 }
  0x6e   :  { %373 = vmatpush3.bf16.msra.mxu1 %v410_v11 }
  0x6f   :  { %374 = vmatprep.subr.bf16.mxu1 %v572_v1 }
  0x72   :  { %375 = vmatpush3.bf16.msra.mxu1 %v411_v12 }
  0x73   :  { %376 = vmatprep.subr.bf16.mxu1 %v572_v1 }
  0x76   :  { %377 = vmatpush3.bf16.msra.mxu1 %v412_v13 }
  0x77   :  { %378 = vmatprep.subr.bf16.mxu1 %v572_v1 }
  0x7a   :  { %379 = vmatpush3.bf16.msra.mxu1 %v413_v14 }
 0x134   :  { %v152_v16 = vpop.f32.mrb[0].mxu0 }
 0x135   :  { %v153_v17 = vadd.f32 %v335_v15, %v152_v16  ;;  %v362_v18 = vpop.f32.mrb[1].mxu0 }
 0x136   :  { %v155_v19 = vpop.f32.mrb[2].mxu0 }
 0x137   :  { %v156_v20 = vadd.f32 %v335_v15, %v155_v19  ;;  %v363_v21 = vpop.f32.mrb[3].mxu0  ;;  %v159_v22 = vmax.f32 %v153_v17, 0.0 }
 0x139   :  { %v160_v23 = vmax.f32 %v156_v20, 0.0 }
 0x13b   :  { %v161_v24 = vpack.c.bf16 %v160_v23, %v159_v22 }
 0x13d   :  { %381 = vmatmul.mubr.bf16.vlgmr.msra.gmra.mrb[0].mxu1 %v161_v24 }
 0x20f   :  { %332 = sbr.rel (%p331_p12) target bundleno = 690 (0x2b2), region = 66 }
 0x210   :  { %v267_v26 = vpop.f32.mrb[0].mxu1 }
 0x211   :  { %v268_v27 = vadd.f32 %v338_v25, %v267_v26  ;;  %v382_v28 = vpop.f32.mrb[1].mxu1 }
 0x212   :  { %v270_v29 = vpop.f32.mrb[2].mxu1 }
 0x213   :  { %v274_v30 = vmax.f32 %v268_v27, 0.0  ;;  %v271_v31 = vadd.f32 %v338_v25, %v270_v29  ;;  %v383_v32 = vpop.f32.mrb[3].mxu1 }
 0x215   :  { %v275_v33 = vmax.f32 %v271_v31, 0.0 }
 0x216 LB: > { %v574_v34 = vmov 7   ;;  %s285_s22 = scvt.s32.f32 %s562_s0  ;;  %v575_v36 = vmov 0   ;;  %s308_s23 = scalar_lea.vmem [#allocation14], %s562_s0  ;;  %s562_s0 = sphi %s725_s0, %s282_s0  }
 0x217   : > { %415 = vset.pattern.permute.xlu0 %v574_v34  ;;  %v309_v49 = vld [vmem:[%s308_s23] sm:$0x1]  ;;  %s282_s0 = sadd.s32 1, %s562_s0  }
 0x218   : > { %v286_v35 = vstv %s285_s22  ;;  %p281_p13 = scmp.ge.s32.totalorder %s282_s0, %s278_s14 }
 0x219   : > { %vm287_vm3 = vcmp.eq.f32.partialorder %v95_v5, %v286_v35  ;;  %vm288_vm4 = vcmp.eq.f32.partialorder %v96_v6, %v286_v35 }
 0x21a   : > { %v289_v37 = vsel %vm287_vm3, 1, %v575_v36  ;;  %v290_v38 = vsel %vm288_vm4, 1, %v575_v36 }
 0x21b   : > { %292 = vperm.xlu0 %415, %v289_v37  }
 0x21f   : > { %295 = vperm.xlu0 %415, %v290_v38  }
 0x29a   : > { %v293_v39 = vpop.permute.xlu0 %292 }
 0x29b   : > { %vm297_vm5 = vcmp.eq.s32.totalorder %v293_v39, 1 }
 0x29c   : > { %v299_v41 = vsel %vm297_vm5, %v274_v30, -inf }
 0x29e   : > { %v296_v40 = vpop.permute.xlu0 %295 }
 0x29f   : > { %vm298_vm6 = vcmp.eq.s32.totalorder %v296_v40, 1 }
 0x2a0   : > { %v300_v42 = vsel %vm298_vm6, %v275_v33, -inf }
 0x2a1   : > { %v301_v43 = vmax.f32 %v299_v41, %v300_v42 }
 0x2a3   : > { %v302_v44 = vrot.slane %v301_v43, 4 }
 0x2a5   : > { %v303_v45 = vmax.f32 %v301_v43, %v302_v44 }
 0x2a7   : > { %v304_v46 = vrot.slane %v303_v45, 2 }
 0x2a9   : > { %v305_v47 = vmax.f32 %v303_v45, %v304_v46 }
 0x2ab   : > { %v306_v48 = vrot.slane %v305_v47, 1  ;;  %284 = sbr.rel (!%p281_p13) target bundleno = 534 (0x216), region = 72 }
 0x2ad   : > { %v307_v50 = vmax.f32 %v305_v47, %v306_v48 }
 0x2af   : > { %v310_v51 = vmax.f32 %v309_v49, %v307_v50 }
 0x2b1   : > { %311 = vst [vmem:[%s308_s23] sm:$0x1] %v310_v51 }
 0x2b2 PF:  { %s576_s2 = smov [#allocation14]  }
 0x2b3   :  { %s318_s16 = sshll.u32 %s576_s2, 4  ;;  %s319_s16 = int_to_ptr.vmem [resolvable:$true] %s318_s16 }
 0x2b4   :  { %s526_s24 = scalar_lea.vmem %s319_s16, 128  ;;  %p531_p1 = scmp.lt.s32.totalorder %s319_s16, %s319_s16 }
 0x2b5   :  { %p527_p0 = scmp.ne.s32.totalorder %s319_s16, %s526_s24  ;;  %p532_p2 = scmp.lt.s32.totalorder %s526_s24, %s526_s24 }
 0x2b7   :  { %p533_p3 = por %p532_p2, %p531_p1 }
 0x2b9   :  { %p534_p4 = pnand %p533_p3, %p527_p0 }
 0x2bb   :  { %537 = shalt.err (!%p534_p4)
}
 0x2bc   :  { %s538_s28 = scalar_lea.hbm %s732_s7, 128 }
 0x2bd   :  { %p539_p5 = scmp.ne.s32.totalorder %s732_s7, %s538_s28  ;;  %p542_p6 = scmp.lt.u32.totalorder %s538_s28, %s732_s7 }
 0x2bf   :  { %p544_p7 = pnand %p542_p6, %p539_p5 }
 0x2c1   :  { %547 = shalt.err (!%p544_p7)
}
 0x2c2   :  { %321 = dma.vmem_to_hbm [thread:$0]  %s319_s16, 128, %s732_s7, [#allocation7]  }
 0x2c3   :  { %558 = dma.done.wait [#allocation7], 128  }
 0x2c4   :  { %559 = vsyncadd [#allocation7], 4294967168 }
 0x2c5   :  { %325 = vsyncpa [#allocation6], 1 }
 0x2c6   :  { %326 = vsyncpa [#allocation9], 1 }
 0x2c7   :  { %327 = vsyncpa [#allocation12], 1 }
 0x2c8   :  { %328 = vsyncpa [#allocation7], 1 }

</bundles_post_ra>
